<compile_context>
chip_gen: v7x
topology: tpu7x:2x2x1
jax: 0.10.0
libtpu: 0.0.40
codegen_flags: <defaults>
</compile_context>

<pallas_src>
import functools
import math

import jax
import jax.numpy as jnp
from jax.experimental import pallas as pl
from jax.experimental.pallas import tpu as pltpu

_EPS = 1e-6
_LOG_EPS = math.log(_EPS)            # log(1e-6)
_LOG_1M_EPS = math.log(1.0 - _EPS)   # log(1 - 1e-6)


def _tpu_kind():
    try:
        for d in jax.devices():
            if d.platform == "tpu":
                return d.device_kind.lower()
    except Exception:
        pass
    return ""


_KIND = _tpu_kind()
# bf16 tanh only where a bf16 EUP path exists (v6e / v7x); f32 otherwise (v5e-safe).
_USE_BF16_TANH = ("v6" in _KIND) or ("v7" in _KIND) or ("7x" in _KIND)
# MXU M-dim target: 256 on 2x256^2 MXUs (v6e/v7x), 128 on 4x128^2 (v5e and older).
_TARGET_ROWS = 128 if any(v in _KIND for v in ("v2", "v3", "v4", "v5")) else 256


def _choose_eb(E, rows_per_episode, target_rows):
    """Episodes per grid step.

    Amortize the ~0.35us/step grid overhead and make the fused pooler matmul
    M = Eb*(Ns+Nq) >= target_rows, while keeping >= 2 grid steps (v7x megacore
    TC sharding) whenever the episode count allows it.  VMEM is not a
    constraint at these footprints, so Eb is sized purely for occupancy.
    """
    want = max(1, -(-target_rows // rows_per_episode))        # ceil division
    divisors = [d for d in range(1, E + 1) if E % d == 0]
    for d in divisors:                     # smallest Eb hitting M target with >=2 steps
        if d >= want and E // d >= 2:
            return d
    for d in divisors:                     # else hit the M target even if single-step
        if d >= want:
            return d
    return E                               # E too small to reach target: one big step


def proto_loss_kernel(s_ref, q_ref, w_ref, b_ref, tgt_ref, loss_ref, *, bf16_tanh):
    Eb, Ns, H = s_ref.shape
    _, Nq, _ = q_ref.shape
    rows_s = Eb * Ns

    w = w_ref[...]                                                  # [H, H] bf16, VMEM-resident
    b = b_ref[...]                                                  # [1, H] f32

    # Stack support + query rows in VMEM (no HBM concat in the wrapper), cast to
    # bf16, and run ONE fused pooler matmul with f32 MXU accumulation.
    s = s_ref[...].reshape(rows_s, H)                               # [Eb*Ns, H] f32
    q = q_ref[...].reshape(Eb * Nq, H)                              # [Eb*Nq, H] f32
    x = jnp.concatenate([s, q], axis=0).astype(jnp.bfloat16)        # [Eb*(Ns+Nq), H]

    pre = jnp.dot(x, w, preferred_element_type=jnp.float32) + b     # [Eb*(Ns+Nq), H] f32
    if bf16_tanh:
        # v6e/v7x: bf16 EUP tanh (~2x throughput); loss math stays in f32.
        emb = jnp.tanh(pre.astype(jnp.bfloat16)).astype(jnp.float32)
    else:
        # v5e / unknown chip: no bf16 VPU/EUP path -> keep f32 post-math.
        emb = jnp.tanh(pre)

    s_emb = emb[:rows_s, :].reshape(Eb, Ns, H)                      # [Eb, Ns, H]
    q_emb = emb[rows_s:, :].reshape(Eb, Nq, H)                      # [Eb, Nq, H]

    # Per-episode prototype = mean over the support batch (dim=0 in PyTorch).
    proto = jnp.mean(s_emb, axis=1, keepdims=True)                  # [Eb, 1, H]

    # Squared L2 distance along hidden dim (only d^2 is ever needed).
    diff = proto - q_emb                                            # [Eb, Nq, H]
    d2 = jnp.sum(diff * diff, axis=-1)                              # [Eb, Nq]

    # log p directly from -0.5*d2; clip in log space == clip(exp(.), eps, 1-eps).
    logp = jnp.clip(-0.5 * d2, _LOG_EPS, _LOG_1M_EPS)               # [Eb, Nq]
    # Upper clip guarantees 1 - exp(logp) >= eps, so plain log is safe and
    # mirrors the module's clamp-then-log semantics exactly.
    log1mp = jnp.log(1.0 - jnp.exp(logp))                           # [Eb, Nq]

    # Binary cross entropy against yes/no targets (lane-major), then per-episode mean.
    t = tgt_ref[...].reshape(Eb, Nq)                                # [Eb, Nq] f32
    bce = -t * logp - (1.0 - t) * log1mp                            # [Eb, Nq]
    loss_eb = jnp.mean(bce, axis=-1, keepdims=True)                 # [Eb, 1]

    # Lane-dense store: per-episode loss broadcast across the 128-lane block.
    loss_ref[...] = jnp.broadcast_to(loss_eb[:, :, None], loss_ref.shape)


def prototypical_loss_batched(support_hidden, query_hidden, w_pool, b_pool, targets,
                              *, episodes_per_step=None):
    """Per-episode prototypical loss.

    support_hidden: [E, Ns, H], query_hidden: [E, Nq, H],
    w_pool: [H, H], b_pool: [H], targets: [E, Nq]  ->  losses [E]
    """
    E, Ns, H = support_hidden.shape
    E2, Nq, H2 = query_hidden.shape
    assert E == E2 and H == H2
    # Keep the in-kernel reshapes/slices on (8,128) tile boundaries (free views).
    assert Ns % 8 == 0 and Nq % 8 == 0, "pad support/query rows to a multiple of 8"

    Eb = episodes_per_step or _choose_eb(E, Ns + Nq, _TARGET_ROWS)
    assert E % Eb == 0
    steps = E // Eb

    s = support_hidden.astype(jnp.float32)          # cast to bf16 happens in-kernel
    q = query_hidden.astype(jnp.float32)
    w = w_pool.astype(jnp.bfloat16)                 # resident MXU weight
    b = b_pool.reshape(1, H).astype(jnp.float32)
    t = targets.reshape(E, 1, Nq).astype(jnp.float32)   # lane-major targets

    kernel = functools.partial(proto_loss_kernel, bf16_tanh=_USE_BF16_TANH)

    out = pl.pallas_call(
        kernel,
        out_shape=jax.ShapeDtypeStruct((E, 1, 128), jnp.float32),
        grid_spec=pltpu.PrefetchScalarGridSpec(
            num_scalar_prefetch=0,
            grid=(steps,),
            in_specs=[
                pl.BlockSpec((Eb, Ns, H), lambda i: (i, 0, 0)),   # Eb episodes of support
                pl.BlockSpec((Eb, Nq, H), lambda i: (i, 0, 0)),   # Eb episodes of query
                pl.BlockSpec((H, H), lambda i: (0, 0)),           # W resident in VMEM
                pl.BlockSpec((1, H), lambda i: (0, 0)),           # b resident in VMEM
                pl.BlockSpec((Eb, 1, Nq), lambda i: (i, 0, 0)),   # lane-major targets
            ],
            out_specs=pl.BlockSpec((Eb, 1, 128), lambda i: (i, 0, 0)),
        ),
        compiler_params=pltpu.CompilerParams(
            # Episode-block axis is independent -> megacore/TC sharding on v7x.
            dimension_semantics=("parallel",)),
    )(s, q, w, b, t)
    return out[:, 0, 0]


def prototypical_loss(support_hidden, query_hidden, w_pool, b_pool, targets):
    """Single-episode loss, matching PrototypicalNetwork.forward()."""
    losses = prototypical_loss_batched(
        support_hidden[None], query_hidden[None], w_pool, b_pool, targets[None])
    return losses[0]


def prototypical_loss_ref(support_hidden, query_hidden, w_pool, b_pool, targets,
                          matmul_dtype=jnp.float32, bf16_tanh=False):
    # Pure-JAX reference mirroring the PyTorch module (pooler + loss).
    def pooler(x):
        pre = jnp.dot(x.astype(matmul_dtype), w_pool.astype(matmul_dtype),
                      preferred_element_type=jnp.float32) + b_pool
        if bf16_tanh:
            return jnp.tanh(pre.astype(jnp.bfloat16)).astype(jnp.float32)
        return jnp.tanh(pre)

    s_emb = pooler(support_hidden)
    q_emb = pooler(query_hidden)
    proto = s_emb.mean(axis=0)
    d = jnp.linalg.norm(proto[None, :] - q_emb, axis=1)
    probs = jnp.clip(jnp.exp(-0.5 * d ** 2), 1e-6, 1.0 - 1e-6)
    t = targets.astype(jnp.float32)
    loss = -t * jnp.log(probs) - (1.0 - t) * jnp.log(1.0 - probs)
    return loss.mean()


if __name__ == "__main__":
    Ns, Nq, H = 8, 8, 128   # small support/query batches, BERT-like hidden (scaled down)
    E = 32                  # episodes; batched Eb-per-step inside the kernel

    key = jax.random.PRNGKey(0)
    k1, k2, k3, k4, k5 = jax.random.split(key, 5)

    # Synthetic CLS hidden states standing in for the BERT encoder output.
    support_hidden = jax.random.normal(k1, (E, Ns, H), dtype=jnp.float32) * 0.1
    query_hidden = jax.random.normal(k2, (E, Nq, H), dtype=jnp.float32) * 0.1

    # Deterministic pooler parameters (BERT pooler: Linear(H, H) + tanh).
    w_pool = jax.random.normal(k3, (H, H), dtype=jnp.float32) * (1.0 / jnp.sqrt(H))
    b_pool = jax.random.normal(k4, (H,), dtype=jnp.float32) * 0.01

    # targets: 1.0 if label == 'yes' else 0.0
    targets = (jax.random.uniform(k5, (E, Nq)) > 0.5).astype(jnp.float32)

    # --- single episode (matches the PyTorch forward) ---
    loss = jax.block_until_ready(
        prototypical_loss(support_hidden[0], query_hidden[0], w_pool, b_pool, targets[0]))
    ref_b = prototypical_loss_ref(support_hidden[0], query_hidden[0], w_pool, b_pool,
                                  targets[0], matmul_dtype=jnp.bfloat16,
                                  bf16_tanh=_USE_BF16_TANH)
    ref_f = prototypical_loss_ref(support_hidden[0], query_hidden[0], w_pool, b_pool,
                                  targets[0], matmul_dtype=jnp.float32, bf16_tanh=False)
    assert jnp.allclose(loss, ref_b, rtol=5e-3, atol=1e-4), (loss, ref_b)
    assert jnp.allclose(loss, ref_f, rtol=5e-2, atol=1e-3), (loss, ref_f)

    # --- batched episodes (Eb per grid step, resident W/b, lane-dense stores) ---
    losses = jax.block_until_ready(
        prototypical_loss_batched(support_hidden, query_hidden, w_pool, b_pool, targets))
    for e in range(E):
        r = prototypical_loss_ref(support_hidden[e], query_hidden[e], w_pool, b_pool,
                                  targets[e], matmul_dtype=jnp.bfloat16,
                                  bf16_tanh=_USE_BF16_TANH)
        assert jnp.allclose(losses[e], r, rtol=5e-3, atol=1e-4), (e, losses[e], r)

    print("KERNEL_OK")
</pallas_src>

<mosaic_0001>
module attributes {stable_mosaic.version = 11 : i64} {
  func.func @proto_loss_kernel(%arg0: i32, %arg1: memref<1x8x128xf32, #tpu.memory_space<vmem>>, %arg2: memref<1x8x128xf32, #tpu.memory_space<vmem>>, %arg3: memref<128x128xbf16, #tpu.memory_space<vmem>>, %arg4: memref<1x128xf32, #tpu.memory_space<vmem>>, %arg5: memref<1x1x8xf32, #tpu.memory_space<vmem>>, %arg6: memref<1x1x128xf32, #tpu.memory_space<vmem>>) attributes {dimension_semantics = [#tpu.dimension_semantics<parallel>], iteration_bounds = array<i64: 1>, scalar_prefetch = 0 : i64, scratch_operands = 0 : i64, tpu.core_type = #tpu.core_type<tc>, window_params = [{transform_indices = @transform_0, window_bounds = array<i64: 1, 8, 128>}, {transform_indices = @transform_1, window_bounds = array<i64: 1, 8, 128>}, {pipeline_mode = #tpu.pipeline_mode<synchronous>, transform_indices = @transform_2, window_bounds = array<i64: 128, 128>}, {pipeline_mode = #tpu.pipeline_mode<synchronous>, transform_indices = @transform_3, window_bounds = array<i64: 1, 128>}, {transform_indices = @transform_4, window_bounds = array<i64: 1, 1, 8>}, {transform_indices = @transform_5, window_bounds = array<i64: 1, 1, 128>}]} {
    %c0 = arith.constant 0 : index
    %c0_0 = arith.constant 0 : index
    %0 = vector.load %arg3[%c0, %c0_0] : memref<128x128xbf16, #tpu.memory_space<vmem>>, vector<128x128xbf16>
    %c0_1 = arith.constant 0 : index
    %c0_2 = arith.constant 0 : index
    %1 = vector.load %arg4[%c0_1, %c0_2] : memref<1x128xf32, #tpu.memory_space<vmem>>, vector<1x128xf32>
    %c0_3 = arith.constant 0 : index
    %c0_4 = arith.constant 0 : index
    %c0_5 = arith.constant 0 : index
    %2 = vector.load %arg1[%c0_3, %c0_4, %c0_5] : memref<1x8x128xf32, #tpu.memory_space<vmem>>, vector<1x8x128xf32>
    %3 = vector.shape_cast %2 : vector<1x8x128xf32> to vector<8x128xf32>
    %c0_6 = arith.constant 0 : index
    %c0_7 = arith.constant 0 : index
    %c0_8 = arith.constant 0 : index
    %4 = vector.load %arg2[%c0_6, %c0_7, %c0_8] : memref<1x8x128xf32, #tpu.memory_space<vmem>>, vector<1x8x128xf32>
    %5 = vector.shape_cast %4 : vector<1x8x128xf32> to vector<8x128xf32>
    %6 = tpu.concatenate %3, %5 in 0 : vector<8x128xf32>, vector<8x128xf32> -> vector<16x128xf32>
    %7 = arith.truncf %6 : vector<16x128xf32> to vector<16x128xbf16>
    %cst = arith.constant dense<0.000000e+00> : vector<16x128xf32>
    %8 = tpu.matmul %7, %0, %cst {dimension_numbers = #tpu.dot_dimension_numbers<[1], [0], [0], [1], [0, 0, 1, 1], [], []>} : vector<16x128xbf16>, vector<128x128xbf16>, vector<16x128xf32> -> vector<16x128xf32>
    %9 = vector.broadcast %1 : vector<1x128xf32> to vector<16x128xf32>
    %10 = arith.addf %8, %9 : vector<16x128xf32>
    %11 = math.tanh %10 : vector<16x128xf32>
    %12 = vector.extract_strided_slice %11 {offsets = [0, 0], sizes = [8, 128], strides = [1, 1]} : vector<16x128xf32> to vector<8x128xf32>
    %13 = vector.shape_cast %12 : vector<8x128xf32> to vector<1x8x128xf32>
    %14 = vector.extract_strided_slice %11 {offsets = [8, 0], sizes = [8, 128], strides = [1, 1]} : vector<16x128xf32> to vector<8x128xf32>
    %15 = vector.shape_cast %14 : vector<8x128xf32> to vector<1x8x128xf32>
    %cst_9 = arith.constant dense<0.000000e+00> : vector<1x128xf32>
    %16 = vector.multi_reduction <add>, %13, %cst_9 [1] : vector<1x8x128xf32> to vector<1x128xf32>
    %17 = vector.shape_cast %16 : vector<1x128xf32> to vector<1x1x128xf32>
    %cst_10 = arith.constant 8.000000e+00 : f32
    %18 = vector.broadcast %cst_10 : f32 to vector<1x1x128xf32>
    %19 = arith.divf %17, %18 : vector<1x1x128xf32>
    %20 = vector.broadcast %19 : vector<1x1x128xf32> to vector<1x8x128xf32>
    %21 = arith.subf %20, %15 : vector<1x8x128xf32>
    %22 = arith.mulf %21, %21 : vector<1x8x128xf32>
    %cst_11 = arith.constant dense<0.000000e+00> : vector<1x8xf32>
    %23 = vector.multi_reduction <add>, %22, %cst_11 [2] : vector<1x8x128xf32> to vector<1x8xf32>
    %cst_12 = arith.constant -5.000000e-01 : f32
    %24 = vector.broadcast %cst_12 : f32 to vector<1x8xf32>
    %25 = arith.mulf %24, %23 : vector<1x8xf32>
    %cst_13 = arith.constant -13.8155107 : f32
    %cst_14 = arith.constant -1.00000045E-6 : f32
    %26 = vector.broadcast %cst_13 : f32 to vector<1x8xf32>
    %27 = arith.maximumf %26, %25 : vector<1x8xf32>
    %28 = vector.broadcast %cst_14 : f32 to vector<1x8xf32>
    %29 = arith.minimumf %28, %27 : vector<1x8xf32>
    %30 = math.exp %29 : vector<1x8xf32>
    %cst_15 = arith.constant 1.000000e+00 : f32
    %31 = vector.broadcast %cst_15 : f32 to vector<1x8xf32>
    %32 = arith.subf %31, %30 : vector<1x8xf32>
    %33 = math.log %32 : vector<1x8xf32>
    %c0_16 = arith.constant 0 : index
    %c0_17 = arith.constant 0 : index
    %c0_18 = arith.constant 0 : index
    %34 = vector.load %arg5[%c0_16, %c0_17, %c0_18] : memref<1x1x8xf32, #tpu.memory_space<vmem>>, vector<1x1x8xf32>
    %35 = vector.shape_cast %34 : vector<1x1x8xf32> to vector<1x8xf32>
    %cst_19 = arith.constant 0.000000e+00 : f32
    %36 = vector.broadcast %cst_19 : f32 to vector<1x8xf32>
    %37 = arith.subf %36, %35 : vector<1x8xf32>
    %38 = arith.mulf %37, %29 : vector<1x8xf32>
    %cst_20 = arith.constant 1.000000e+00 : f32
    %39 = vector.broadcast %cst_20 : f32 to vector<1x8xf32>
    %40 = arith.subf %39, %35 : vector<1x8xf32>
    %41 = arith.mulf %40, %33 : vector<1x8xf32>
    %42 = arith.subf %38, %41 : vector<1x8xf32>
    %cst_21 = arith.constant dense<0.000000e+00> : vector<1xf32>
    %43 = vector.multi_reduction <add>, %42, %cst_21 [1] : vector<1x8xf32> to vector<1xf32>
    %44 = vector.shape_cast %43 : vector<1xf32> to vector<1x1xf32>
    %cst_22 = arith.constant 8.000000e+00 : f32
    %45 = vector.broadcast %cst_22 : f32 to vector<1x1xf32>
    %46 = arith.divf %44, %45 : vector<1x1xf32>
    %47 = vector.shape_cast %46 : vector<1x1xf32> to vector<1x1x1xf32>
    %48 = vector.shape_cast %47 : vector<1x1x1xf32> to vector<1x1x1xf32>
    %49 = vector.broadcast %48 : vector<1x1x1xf32> to vector<1x1x128xf32>
    %c0_23 = arith.constant 0 : index
    %c0_24 = arith.constant 0 : index
    %c0_25 = arith.constant 0 : index
    %50 = vector.load %arg6[%c0_23, %c0_24, %c0_25] : memref<1x1x128xf32, #tpu.memory_space<vmem>>, vector<1x1x128xf32>
    tpu.vector_store %arg6[%c0_23, %c0_24, %c0_25], %49 {strides = array<i32>} : memref<1x1x128xf32, #tpu.memory_space<vmem>>, vector<1x1x128xf32>,
    return
  }
  func.func @transform_0(%arg0: i32) -> (i32, i32, i32) {
    %c0_i32 = arith.constant 0 : i32
    %c0_i32_0 = arith.constant 0 : i32
    %c0_i32_1 = arith.constant 0 : i32
    return %arg0, %c0_i32, %c0_i32_0 : i32, i32, i32
  }
  func.func @transform_1(%arg0: i32) -> (i32, i32, i32) {
    %c0_i32 = arith.constant 0 : i32
    %c0_i32_0 = arith.constant 0 : i32
    %c0_i32_1 = arith.constant 0 : i32
    return %arg0, %c0_i32, %c0_i32_0 : i32, i32, i32
  }
  func.func @transform_2(%arg0: i32) -> (i32, i32) {
    %c0_i32 = arith.constant 0 : i32
    %c0_i32_0 = arith.constant 0 : i32
    %c0_i32_1 = arith.constant 0 : i32
    return %c0_i32, %c0_i32_0 : i32, i32
  }
  func.func @transform_3(%arg0: i32) -> (i32, i32) {
    %c0_i32 = arith.constant 0 : i32
    %c0_i32_0 = arith.constant 0 : i32
    %c0_i32_1 = arith.constant 0 : i32
    return %c0_i32, %c0_i32_0 : i32, i32
  }
  func.func @transform_4(%arg0: i32) -> (i32, i32, i32) {
    %c0_i32 = arith.constant 0 : i32
    %c0_i32_0 = arith.constant 0 : i32
    %c0_i32_1 = arith.constant 0 : i32
    return %arg0, %c0_i32, %c0_i32_0 : i32, i32, i32
  }
  func.func @transform_5(%arg0: i32) -> (i32, i32, i32) {
    %c0_i32 = arith.constant 0 : i32
    %c0_i32_0 = arith.constant 0 : i32
    %c0_i32_1 = arith.constant 0 : i32
    return %arg0, %c0_i32, %c0_i32_0 : i32, i32, i32
  }
}

</mosaic_0001>

<bundles_post_ra>
// kernel: tpu_custom_call.1
= control target key start
LH: loop header
LB: loop body
LE: loop exit
PB: predicated region body
PF: predicated region fallthrough
CT: control target
= control target key end

     0   :  { %10 = vsyncpa [#allocation3], 0  ;;  %s710_s0 = inlined_call_operand.hbm [shape: f32[1,8,128], index: 0, kind: input, shape index: {}]   ;;  %s711_s1 = inlined_call_operand.hbm [shape: f32[1,8,128], index: 1, kind: input, shape index: {}]   ;;  %s712_s2 = inlined_call_operand.hbm [shape: bf16[128,128], index: 2, kind: input, shape index: {}]   ;;  %s713_s3 = inlined_call_operand.vmem [shape: f32[1,128], index: 3, kind: input, shape index: {}]   ;;  %s714_s4 = inlined_call_operand.vmem [shape: f32[1,1,8], index: 4, kind: input, shape index: {}]   ;;  %s715_s5 = inlined_call_operand.hbm [shape: f32[1,1,128], index: 5, kind: output, shape index: {}]  }
   0x1   :  { %11 = vsyncpa [#allocation6], 0 }
   0x2   :  { %12 = vsyncpa [#allocation4], 0  ;;  %s594_s18 = smov [#allocation5]   ;;  %s595_s20 = smov [#allocation2]  }
   0x3   :  { %s29_s19 = sshll.u32 %s594_s18, 4  ;;  %s19_s21 = sshll.u32 %s595_s20, 4  ;;  %s30_s19 = int_to_ptr.vmem [resolvable:$true] %s29_s19  ;;  %s20_s21 = int_to_ptr.vmem [resolvable:$true] %s19_s21 }
   0x4   :  { %s500_s24 = scalar_lea.hbm %s711_s1, 128 }
   0x5   :  { %p501_p0 = scmp.ne.s32.totalorder %s711_s1, %s500_s24  ;;  %p504_p1 = scmp.lt.u32.totalorder %s500_s24, %s711_s1 }
   0x7   :  { %p506_p2 = pnand %p504_p1, %p501_p0 }
   0x9   :  { %509 = shalt.err (!%p506_p2)
}
   0xa   :  { %s510_s29 = scalar_lea.vmem %s30_s19, 128  ;;  %p515_p4 = scmp.lt.s32.totalorder %s30_s19, %s30_s19 }
   0xb   :  { %p511_p3 = scmp.ne.s32.totalorder %s30_s19, %s510_s29  ;;  %p516_p5 = scmp.lt.s32.totalorder %s510_s29, %s510_s29 }
   0xd   :  { %p517_p6 = por %p516_p5, %p515_p4 }
   0xf   :  { %p518_p7 = pnand %p517_p6, %p511_p3 }
  0x11   :  { %521 = shalt.err (!%p518_p7)
}
  0x12   :  { %32 = dma.hbm_to_vmem [thread:$0]  %s711_s1, 128, %s30_s19, [#allocation6]  }
  0x13   :  { %s522_s9 = scalar_lea.hbm %s710_s0, 128 }
  0x14   :  { %p523_p8 = scmp.ne.s32.totalorder %s710_s0, %s522_s9  ;;  %p526_p9 = scmp.lt.u32.totalorder %s522_s9, %s710_s0 }
  0x16   :  { %p528_p10 = pnand %p526_p9, %p523_p8 }
  0x18   :  { %531 = shalt.err (!%p528_p10)
}
  0x19   :  { %s532_s14 = scalar_lea.vmem %s20_s21, 128  ;;  %p537_p12 = scmp.lt.s32.totalorder %s20_s21, %s20_s21 }
  0x1a   :  { %p533_p11 = scmp.ne.s32.totalorder %s20_s21, %s532_s14  ;;  %p538_p13 = scmp.lt.s32.totalorder %s532_s14, %s532_s14 }
  0x1c   :  { %p539_p0 = por %p538_p13, %p537_p12 }
  0x1e   :  { %p540_p1 = pnand %p539_p0, %p533_p11 }
  0x20   :  { %543 = shalt.err (!%p540_p1)
}
  0x21   :  { %22 = dma.hbm_to_vmem [thread:$0]  %s710_s0, 128, %s20_s21, [#allocation3]  }
  0x22   :  { %s596_s16 = smov [#allocation7]   ;;  %s544_s20 = scalar_lea.hbm %s712_s2, 1024 }
  0x23   :  { %s38_s17 = sshll.u32 %s596_s16, 4  ;;  %p545_p2 = scmp.ne.s32.totalorder %s712_s2, %s544_s20  ;;  %s39_s17 = int_to_ptr.vmem [resolvable:$true] %s38_s17 }
  0x24   :  { %p548_p3 = scmp.lt.u32.totalorder %s544_s20, %s712_s2 }
  0x26   :  { %p550_p4 = pnand %p548_p3, %p545_p2 }
  0x28   :  { %553 = shalt.err (!%p550_p4)
}
  0x29   :  { %s554_s26 = scalar_lea.vmem %s39_s17, 1024  ;;  %p559_p6 = scmp.lt.s32.totalorder %s39_s17, %s39_s17 }
  0x2a   :  { %p555_p5 = scmp.ne.s32.totalorder %s39_s17, %s554_s26  ;;  %p560_p7 = scmp.lt.s32.totalorder %s554_s26, %s554_s26 }
  0x2c   :  { %p561_p8 = por %p560_p7, %p559_p6 }
  0x2e   :  { %p562_p9 = pnand %p561_p8, %p555_p5 }
  0x30   :  { %565 = shalt.err (!%p562_p9)
}
  0x31   :  { %s597_s0 = smov 64   ;;  %s598_s21 = smov 4  }
  0x32   :  { %44 = dma.hbm_to_vmem [thread:$0]  %s712_s2, 1024, %s39_s17, [#allocation6], %s597_s0, %s597_s0, %s598_s21  }
  0x33   :  { %588 = dma.done.wait [#allocation3], 128  }
  0x34   :  { %589 = vsyncadd [#allocation3], 4294967168 }
  0x35   :  { %590 = dma.done.wait [#allocation6], 1152  }
  0x36   :  { %591 = vsyncadd [#allocation6], 4294966144  ;;  %v599_v0 = vmov 0.0   ;;  %vm600_vm0 = vmmov 0   ;;  %v484_v1 = vld [vmem:[#allocation7] sm:$0xff]   ;;  %v485_v2 = vld [vmem:[#allocation7 + $0x8] sm:$0xff]   ;;  %v199_v31 = vlaneseq }
  0x37   :  { %452 = vmatprep.subr.bf16.mxu0 %v599_v0  ;;  %468 = vmatprep.mubr.msk.bf16.mxu0 %vm600_vm0, %v599_v0  ;;  %v486_v3 = vld [vmem:[#allocation7 + $0x10] sm:$0xff]   ;;  %v487_v4 = vld [vmem:[#allocation7 + $0x18] sm:$0xff]   ;;  %v488_v5 = vld [vmem:[#allocation7 + $0x20] sm:$0xff]   ;;  %v601_v30 = vmov 0   ;;  %v602_v35 = vmov 1966171168  }
  0x38   :  { %453 = vmatpush3.bf16.msra.mxu0 %v484_v1  ;;  %v489_v6 = vld [vmem:[#allocation7 + $0x28] sm:$0xff]   ;;  %v490_v7 = vld [vmem:[#allocation7 + $0x30] sm:$0xff]   ;;  %v491_v8 = vld [vmem:[#allocation7 + $0x38] sm:$0xff]   ;;  %482 = vset.pattern.permute.xlu0 %v601_v30  ;;  %v200_v32 = vshrl.u32 %v199_v31, 7  ;;  %v284_v33 = vand.u32 127, %v199_v31  ;;  %v236_v36 = vunpack.c.l.s4 %v602_v35  ;;  %vm412_vm1 = vcmask 57344  }
  0x39   :  { %454 = vmatprep.subr.bf16.mxu0 %v599_v0  ;;  %v76_v9 = vld [vmem:[#allocation2] sm:$0xff]  ;;  %v77_v10 = vld [vmem:[#allocation5] sm:$0xff]  ;;  %483 = vset.pattern.permute.xlu1 %v601_v30  ;;  %s603_s6 = smov [#allocation8]  }
  0x3a   :  { %v78_v11 = vpack.c.bf16 %v77_v10, %v76_v9  ;;  %v434_v12 = vld [vmem:[%s713_s3] ss:$0 sm:$0xff]  ;;  %v673_v34 = vsub.s32 %v284_v33, %v200_v32  ;;  %v237_v39 = vunpack.c.0.s8 %v236_v36  ;;  %v201_v41 = vsub.s32 0, %v200_v32  ;;  %s424_s7 = sshll.u32 %s603_s6, 4  ;;  %s425_s7 = int_to_ptr.vmem [resolvable:$true] %s424_s7 }
  0x3b   :  { %v205_v42 = vsub.s32 1, %v200_v32  ;;  %v209_v43 = vsub.s32 2, %v200_v32  ;;  %v213_v44 = vsub.s32 3, %v200_v32  ;;  %v217_v45 = vsub.s32 4, %v200_v32  ;;  %s570_s8 = scalar_lea.vmem %s425_s7, 32  ;;  %p571_p11 = scmp.lt.s32.totalorder %s425_s7, %s425_s7 }
  0x3c   :  { %455 = vmatpush3.bf16.msra.mxu0 %v485_v2  ;;  %v221_v46 = vsub.s32 5, %v200_v32  ;;  %v225_v47 = vsub.s32 6, %v200_v32  ;;  %v229_v49 = vsub.s32 7, %v200_v32  ;;  %v675_v50 = vsub.s32 %v237_v39, %v200_v32  ;;  %v196_v39 = vld [vmem:[%s714_s4] sm:$0x1]  ;;  %s566_s4 = scalar_lea.vmem %s425_s7, 16 }
  0x3d   :  { %456 = vmatprep.subr.bf16.mxu0 %v599_v0  ;;  %p567_p10 = scmp.ne.s32.totalorder %s425_s7, %s566_s4  ;;  %p572_p12 = scmp.lt.s32.totalorder %s570_s8, %s566_s4 }
  0x3f   :  { %p573_p13 = por %p572_p12, %p571_p11 }
  0x40   :  { %457 = vmatpush3.bf16.msra.mxu0 %v486_v3 }
  0x41   :  { %458 = vmatprep.subr.bf16.mxu0 %v599_v0  ;;  %p574_p0 = pnand %p573_p13, %p567_p10 }
  0x44   :  { %459 = vmatpush3.bf16.msra.mxu0 %v487_v4 }
  0x45   :  { %460 = vmatprep.subr.bf16.mxu0 %v599_v0 }
  0x48   :  { %461 = vmatpush3.bf16.msra.mxu0 %v488_v5 }
  0x49   :  { %462 = vmatprep.subr.bf16.mxu0 %v599_v0 }
  0x4c   :  { %463 = vmatpush3.bf16.msra.mxu0 %v489_v6 }
  0x4d   :  { %464 = vmatprep.subr.bf16.mxu0 %v599_v0 }
  0x50   :  { %465 = vmatpush3.bf16.msra.mxu0 %v490_v7 }
  0x51   :  { %466 = vmatprep.subr.bf16.mxu0 %v599_v0 }
  0x54   :  { %467 = vmatpush3.bf16.msra.mxu0 %v491_v8 }
  0x57   :  { %469 = vmatmul.mubr.bf16.vlgmr.msra.gmra.mrb[0].mxu0 %v78_v11 }
 0x12a   :  { %v167_v13 = vpop.f32.mrb[0].mxu0 }
 0x12b   :  { %v168_v14 = vadd.f32 %v434_v12, %v167_v13  ;;  %v470_v15 = vpop.f32.mrb[1].mxu0 }
 0x12c   :  { %v170_v16 = vpop.f32.mrb[2].mxu0 }
 0x12d   :  { %492 = vtanh.f32 %v168_v14  ;;  %v471_v17 = vpop.f32.mrb[3].mxu0  ;;  %v171_v19 = vadd.f32 %v434_v12, %v170_v16 }
 0x12f   :  { %494 = vtanh.f32 %v171_v19 }
 0x137   :  { %v493_v18 = vpop.eup %492 }
 0x138   :  { %v176_v20 = vrot.slane %v493_v18, 4 }
 0x139   :  { %v495_v27 = vpop.eup %494 }
 0x13a   :  { %v177_v21 = vadd.f32 %v493_v18, %v176_v20 }
 0x13c   :  { %v178_v22 = vrot.slane %v177_v21, 2 }
 0x13e   :  { %v179_v23 = vadd.f32 %v178_v22, %v177_v21 }
 0x140   :  { %v180_v24 = vrot.slane %v179_v23, 1 }
 0x142   :  { %v181_v25 = vadd.f32 %v180_v24, %v179_v23 }
 0x144   :  { %v183_v26 = vmul.f32 0.125, %v181_v25 }
 0x146   :  { %v184_v28 = vsub.f32 %v183_v26, %v495_v27 }
 0x148   :  { %v185_v29 = vmul.f32 %v184_v28, %v184_v28 }
 0x14a   :  { %186 = vadd.xlane.f32.xlu0 %v185_v29 }
 0x1d7   :  { %v187_v37 = vpop.xlane.xlu0 %186 }
 0x1d8   :  { %v188_v38 = vmul.f32 -0.5, %v187_v37 }
 0x1da   :  { %v189_v40 = vmax.f32 %v188_v38, -13.815511 }
 0x1dc   :  { %v190_v48 = vmin.f32 %v189_v40, -1.0000005e-06 }
 0x1de   :  { %v191_v51 = vmul.f32 1.442695, %v190_v48  ;;  %v202_v52 = vrot.slane %v190_v48, %v201_v41  ;;  %v206_v53 = vrot.slane %v190_v48, %v205_v42  ;;  %v210_v54 = vrot.slane %v190_v48, %v209_v43 }
 0x1df   :  { %v214_v55 = vrot.slane %v190_v48, %v213_v44  ;;  %v218_v56 = vrot.slane %v190_v48, %v217_v45  ;;  %v222_v57 = vrot.slane %v190_v48, %v221_v46  ;;  %v226_v58 = vrot.slane %v190_v48, %v225_v47 }
 0x1e0   :  { %496 = vpow2.f32 %v191_v51  ;;  %v230_v59 = vrot.slane %v190_v48, %v229_v49  ;;  %v231_v60 = vcombine.low %v202_v52, %v206_v53 }
 0x1e1   :  { %v232_v61 = vcombine.low %v210_v54, %v214_v55  ;;  %v233_v62 = vcombine.low %v218_v56, %v222_v57 }
 0x1e2   :  { %v234_v63 = vcombine.low %v226_v58, %v230_v59  ;;  %v241_v0 = vrot.slane %v231_v60, %v675_v50 }
 0x1e3   :  { %v248_v1 = vrot.slane %v232_v61, %v675_v50  ;;  %v255_v2 = vrot.slane %v233_v62, %v675_v50 }
 0x1e4   :  { %v262_v3 = vrot.slane %v234_v63, %v675_v50 }
 0x1e5   :  { %v263_v4 = vcombine.low %v241_v0, %v248_v1 }
 0x1e6   :  { %v264_v5 = vcombine.low %v255_v2, %v262_v3 }
 0x1e7   :  { %v271_v6 = vrot.slane %v263_v4, %v675_v50 }
 0x1e8   :  { %v278_v7 = vrot.slane %v264_v5, %v675_v50 }
 0x1ea   :  { %v497_v8 = vpop.eup %496  ;;  %v279_v9 = vcombine.low %v271_v6, %v278_v7 }
 0x1eb   :  { %v193_v10 = vsub.f32 1.0, %v497_v8 }
 0x1ec   :  { %281 = vperm.xlu0 %482, %v279_v9  }
 0x1ed   :  { %498 = vlog2.f32 %v193_v10 }
 0x1f7   :  { %v499_v11 = vpop.eup %498 }
 0x1f8   :  { %v195_v12 = vmul.f32 0.6931472, %v499_v11 }
 0x1fa   :  { %v310_v13 = vrot.slane %v195_v12, %v201_v41  ;;  %v314_v14 = vrot.slane %v195_v12, %v205_v42  ;;  %v318_v15 = vrot.slane %v195_v12, %v209_v43  ;;  %v322_v16 = vrot.slane %v195_v12, %v213_v44 }
 0x1fb   :  { %v326_v17 = vrot.slane %v195_v12, %v217_v45  ;;  %v330_v18 = vrot.slane %v195_v12, %v221_v46  ;;  %v334_v19 = vrot.slane %v195_v12, %v225_v47  ;;  %v338_v20 = vrot.slane %v195_v12, %v229_v49 }
 0x1fc   :  { %v339_v21 = vcombine.low %v310_v13, %v314_v14  ;;  %v340_v22 = vcombine.low %v318_v15, %v322_v16  ;;  %v197_v43 = vsub.f32 0.0, %v196_v39  ;;  %v305_v44 = vsub.f32 1.0, %v196_v39 }
 0x1fd   :  { %v341_v23 = vcombine.low %v326_v17, %v330_v18  ;;  %v342_v24 = vcombine.low %v334_v19, %v338_v20 }
 0x1fe   :  { %v349_v25 = vrot.slane %v339_v21, %v675_v50  ;;  %v356_v26 = vrot.slane %v340_v22, %v675_v50 }
 0x1ff   :  { %v363_v27 = vrot.slane %v341_v23, %v675_v50  ;;  %v370_v28 = vrot.slane %v342_v24, %v675_v50 }
 0x200   :  { %v371_v29 = vcombine.low %v349_v25, %v356_v26 }
 0x201   :  { %v372_v30 = vcombine.low %v363_v27, %v370_v28 }
 0x202   :  { %v379_v31 = vrot.slane %v371_v29, %v675_v50 }
 0x203   :  { %v386_v32 = vrot.slane %v372_v30, %v675_v50 }
 0x205   :  { %v387_v33 = vcombine.low %v379_v31, %v386_v32 }
 0x207   :  { %389 = vperm.xlu1 %483, %v387_v33  }
 0x26b   :  { %v282_v35 = vpop.permute.xlu0 %281 }
 0x26c   :  { %v288_v36 = vrot.slane %v282_v35, %v673_v34 }
 0x26e   :  { %v295_v37 = vrot.slane %v288_v36, %v675_v50 }
 0x270   :  { %v302_v41 = vrot.slane %v295_v37, %v675_v50 }
 0x272   :  { %v304_v46 = vmul.f32 %v302_v41, %v197_v43 }
 0x286   :  { %v390_v38 = vpop.permute.xlu1 %389 }
 0x287   :  { %v394_v40 = vrot.slane %v390_v38, %v673_v34 }
 0x289   :  { %v401_v42 = vrot.slane %v394_v40, %v675_v50 }
 0x28b   :  { %v408_v45 = vrot.slane %v401_v42, %v675_v50 }
 0x28d   :  { %v410_v47 = vmul.f32 %v408_v45, %v305_v44 }
 0x28f   :  { %v411_v48 = vsub.f32 %v304_v46, %v410_v47 }
 0x291   :  { %v413_v49 = vsel %vm412_vm1, %v411_v48, 0.0 }
 0x292   :  { %414 = vadd.xlane.f32.xlu1 %v413_v49 }
 0x31f   :  { %v415_v51 = vpop.xlane.xlu1 %414 }
 0x320   :  { %v416_v52 = vmul.f32 0.125, %v415_v51 }
 0x322   :  { %417 = vst [vmem:[#allocation8] sm:$0x1] %v416_v52 }
 0x323   :  { %577 = shalt.err (!%p574_p0)
}
 0x324   :  { %s578_s11 = scalar_lea.hbm %s715_s5, 16 }
 0x325   :  { %p579_p1 = scmp.ne.s32.totalorder %s715_s5, %s578_s11  ;;  %p582_p2 = scmp.lt.u32.totalorder %s578_s11, %s715_s5 }
 0x327   :  { %p584_p3 = pnand %p582_p2, %p579_p1 }
 0x329   :  { %587 = shalt.err (!%p584_p3)
}
 0x32a   :  { %427 = dma.vmem_to_hbm [thread:$0]  %s425_s7, 16, %s715_s5, [#allocation4]  }
 0x32b   :  { %592 = dma.done.wait [#allocation4], 16  }
 0x32c   :  { %593 = vsyncadd [#allocation4], 4294967280 }
 0x32d   :  { %431 = vsyncpa [#allocation3], 1 }
 0x32e   :  { %432 = vsyncpa [#allocation6], 1 }
 0x32f   :  { %433 = vsyncpa [#allocation4], 1 }

</bundles_post_ra>
